<compile_context>
chip_gen: v5e
topology: v5e:2x2
jax: 0.10.0
libtpu: 0.0.40
codegen_flags: <defaults>
</compile_context>

<pallas_src>
import functools

import jax
import jax.numpy as jnp
from jax import lax
from jax.experimental import pallas as pl
from jax.experimental.pallas import tpu as pltpu

EPS = 1e-5


def _resblock_kernel(x_ref, wr1_ref, b1_ref, g1_ref, be1_ref,
                     wr2_ref, b2_ref, g2_ref, be2_ref,
                     kmat_ref, ones8_ref, srow_ref, out_ref, *, inv_count):
    NH, WC = x_ref.shape

    x = x_ref[...]                       # (NH, WC) f32, also the residual
    kmat = kmat_ref[...]                 # (WC, WC) 0/1: fold over W + per-channel broadcast
    ones8 = ones8_ref[...]               # (8, NH) ones: row reduction on the MXU
    s_up = srow_ref[0]                   # (NH, NH) 0/1: gathers row h-1 (0 at borders)
    s_dn = srow_ref[1]                   # (NH, NH) 0/1: gathers row h+1 (0 at borders)

    def conv3x3(a, wrow_ref, b_lane):
        # vertical taps via exact 0/1 row-shift matmuls (f32, exact gathers)
        taps = (jnp.dot(s_up, a, preferred_element_type=jnp.float32),
                a,
                jnp.dot(s_dn, a, preferred_element_type=jnp.float32))
        acc = jnp.zeros((NH, WC), jnp.float32)
        for k in range(3):               # 3 banded (WC x WC) weight matmuls, K = WC
            acc = acc + jnp.dot(taps[k].astype(wrow_ref.dtype), wrow_ref[k],
                                preferred_element_type=jnp.float32)
        return acc + b_lane

    def batchnorm(y, gamma_l, beta_l):
        # single-pass training-mode stats: sum & sum-of-squares, biased variance
        sum8 = jnp.dot(ones8, y, preferred_element_type=jnp.float32)       # (8, WC)
        sq8 = jnp.dot(ones8, y * y, preferred_element_type=jnp.float32)    # (8, WC)
        mean = jnp.dot(sum8, kmat, preferred_element_type=jnp.float32) * inv_count
        ex2 = jnp.dot(sq8, kmat, preferred_element_type=jnp.float32) * inv_count
        var = ex2 - mean * mean                                            # per-channel
        scale = gamma_l * lax.rsqrt(var + EPS)                             # (8, WC)
        shift = beta_l - mean * scale
        return y * scale[0:1, :] + shift[0:1, :]

    h = conv3x3(x, wr1_ref, b1_ref[...])
    h = jnp.maximum(batchnorm(h, g1_ref[...], be1_ref[...]), 0.0)

    h = conv3x3(h, wr2_ref, b2_ref[...])
    h = batchnorm(h, g2_ref[...], be2_ref[...])

    out_ref[...] = jnp.maximum(h + x, 0.0)                                 # lane-dense store


def _pack_conv_weights(w_hwio, W, C, dtype):
    """(3,3,C,C) HWIO -> (3, W*C, W*C): one banded matrix per vertical tap kh.

    M_kh = sum_kw kron(eye(W, k=-(kw-1)), w[kh, kw]); the shifted-eye bands
    encode the horizontal taps and the zero 'SAME' padding at the W borders.
    """
    mats = []
    for kh in range(3):
        m = jnp.zeros((W * C, W * C), jnp.float32)
        for kw in range(3):
            band = jnp.eye(W, k=-(kw - 1), dtype=jnp.float32)
            m = m + jnp.kron(band, w_hwio[kh, kw].astype(jnp.float32))
        mats.append(m)
    return jnp.stack(mats).astype(dtype)


def _row_shift_matrices(N, H):
    """(2, N*H, N*H) 0/1 matrices: [0] gathers row h-1, [1] gathers row h+1,
    zero across image boundaries (encodes 'SAME' padding along H)."""
    eye_n = jnp.eye(N, dtype=jnp.float32)
    up = jnp.kron(eye_n, jnp.eye(H, k=-1, dtype=jnp.float32))
    dn = jnp.kron(eye_n, jnp.eye(H, k=+1, dtype=jnp.float32))
    return jnp.stack([up, dn])


def resblock_pallas(x_nchw, params, mxu_dtype=jnp.float32):
    """ResBlock forward (training-mode BN). NCHW in / NCHW out."""
    w1, b1, g1, be1, w2, b2, g2, be2 = params
    N, C, H, W = x_nchw.shape
    WC = W * C
    NH = N * H

    # Lane-dense packing: NCHW -> NHWC -> (N*H, W*C). No jnp.pad: the 'SAME'
    # borders are encoded in the 0/1 shift / banded-weight matrices.
    x = jnp.transpose(x_nchw, (0, 2, 3, 1)).astype(jnp.float32).reshape(NH, WC)

    wr1 = _pack_conv_weights(w1, W, C, mxu_dtype)
    wr2 = _pack_conv_weights(w2, W, C, mxu_dtype)
    srow = _row_shift_matrices(N, H)
    kmat = jnp.kron(jnp.ones((W, W), jnp.float32), jnp.eye(C, dtype=jnp.float32))
    ones8 = jnp.ones((8, NH), jnp.float32)

    def lane_tile(v):  # (C,) -> (1, W*C) with pattern v[lane % C]
        return jnp.tile(v.astype(jnp.float32), W).reshape(1, WC)

    b1l, b2l = lane_tile(b1), lane_tile(b2)
    g1l, g2l = lane_tile(g1), lane_tile(g2)
    be1l, be2l = lane_tile(be1), lane_tile(be2)

    def spec(shape):
        return pl.BlockSpec(shape, lambda i, n=len(shape): (0,) * n)

    kernel = functools.partial(_resblock_kernel,
                               inv_count=1.0 / float(N * H * W))

    out = pl.pallas_call(
        kernel,
        grid=(1,),
        in_specs=[spec(x.shape),
                  spec(wr1.shape), spec(b1l.shape), spec(g1l.shape), spec(be1l.shape),
                  spec(wr2.shape), spec(b2l.shape), spec(g2l.shape), spec(be2l.shape),
                  spec(kmat.shape), spec(ones8.shape), spec(srow.shape)],
        out_specs=spec((NH, WC)),
        out_shape=jax.ShapeDtypeStruct((NH, WC), jnp.float32),
        compiler_params=pltpu.CompilerParams(
            dimension_semantics=("arbitrary",),
            # footprint: x/out 16 KiB each, packed weights ~0.4 MiB (f32),
            # fold/shift constants ~80 KiB -> 8 MiB leaves ample headroom and
            # stays well under the scoped default on every generation.
            vmem_limit_bytes=8 * 1024 * 1024),
    )(x, wr1, b1l, g1l, be1l, wr2, b2l, g2l, be2l, kmat, ones8, srow)

    return jnp.transpose(out.reshape(N, H, W, C), (0, 3, 1, 2))


def resblock_ref(x_nchw, params):
    """Pure-JAX reference (same semantics as the PyTorch module in .train())."""
    w1, b1, g1, be1, w2, b2, g2, be2 = params
    x = jnp.transpose(x_nchw, (0, 2, 3, 1)).astype(jnp.float32)

    def conv(a, w, b):
        y = lax.conv_general_dilated(a, w, (1, 1), "SAME",
                                     dimension_numbers=("NHWC", "HWIO", "NHWC"))
        return y + b

    def bn(y, g, be):
        mean = jnp.mean(y, axis=(0, 1, 2), keepdims=True)
        var = jnp.mean(jnp.square(y - mean), axis=(0, 1, 2), keepdims=True)
        return (y - mean) * lax.rsqrt(var + EPS) * g + be

    h = jnp.maximum(bn(conv(x, w1, b1), g1, be1), 0.0)
    h = bn(conv(h, w2, b2), g2, be2)
    out = jnp.maximum(h + x, 0.0)
    return jnp.transpose(out, (0, 3, 1, 2))


def make_params(key, C):
    ks = jax.random.split(key, 8)
    w1 = 0.1 * jax.random.normal(ks[0], (3, 3, C, C), jnp.float32)   # HWIO
    b1 = 0.01 * jax.random.normal(ks[1], (C,), jnp.float32)
    g1 = 1.0 + 0.1 * jax.random.normal(ks[2], (C,), jnp.float32)
    be1 = 0.05 * jax.random.normal(ks[3], (C,), jnp.float32)
    w2 = 0.1 * jax.random.normal(ks[4], (3, 3, C, C), jnp.float32)
    b2 = 0.01 * jax.random.normal(ks[5], (C,), jnp.float32)
    g2 = 1.0 + 0.1 * jax.random.normal(ks[6], (C,), jnp.float32)
    be2 = 0.05 * jax.random.normal(ks[7], (C,), jnp.float32)
    return (w1, b1, g1, be1, w2, b2, g2, be2)


if __name__ == "__main__":
    key = jax.random.PRNGKey(0)
    kx, kp = jax.random.split(key)
    N, C, H, W = 2, 8, 16, 16          # W*C = 128 -> fully lane-dense slabs
    x = jax.random.normal(kx, (N, C, H, W), jnp.float32)
    params = make_params(kp, C)

    ref = jax.block_until_ready(resblock_ref(x, params))

    # exact-structure check: f32 MXU operands
    out_f32 = jax.block_until_ready(resblock_pallas(x, params, jnp.float32))
    assert out_f32.shape == (N, C, H, W)
    err_f32 = float(jnp.max(jnp.abs(out_f32 - ref)))
    assert jnp.allclose(out_f32, ref, atol=2e-4, rtol=2e-4), err_f32

    # bf16 MXU fast path (v6e/v7x): f32 accumulation + f32 BN/elementwise
    out_bf16 = jax.block_until_ready(resblock_pallas(x, params, jnp.bfloat16))
    err_bf16 = float(jnp.max(jnp.abs(out_bf16 - ref)))
    assert jnp.allclose(out_bf16, ref, atol=5e-2, rtol=5e-2), err_bf16

    print("KERNEL_OK")
</pallas_src>

<mosaic_0001>
module attributes {stable_mosaic.version = 11 : i64} {
  func.func @_resblock_kernel(%arg0: i32, %arg1: memref<32x128xf32, #tpu.memory_space<vmem>>, %arg2: memref<3x128x128xf32, #tpu.memory_space<vmem>>, %arg3: memref<1x128xf32, #tpu.memory_space<vmem>>, %arg4: memref<1x128xf32, #tpu.memory_space<vmem>>, %arg5: memref<1x128xf32, #tpu.memory_space<vmem>>, %arg6: memref<3x128x128xf32, #tpu.memory_space<vmem>>, %arg7: memref<1x128xf32, #tpu.memory_space<vmem>>, %arg8: memref<1x128xf32, #tpu.memory_space<vmem>>, %arg9: memref<1x128xf32, #tpu.memory_space<vmem>>, %arg10: memref<128x128xf32, #tpu.memory_space<vmem>>, %arg11: memref<8x32xf32, #tpu.memory_space<vmem>>, %arg12: memref<2x32x32xf32, #tpu.memory_space<vmem>>, %arg13: memref<32x128xf32, #tpu.memory_space<vmem>>) attributes {dimension_semantics = [#tpu.dimension_semantics<arbitrary>], iteration_bounds = array<i64: 1>, scalar_prefetch = 0 : i64, scratch_operands = 0 : i64, tpu.core_type = #tpu.core_type<tc>, window_params = [{pipeline_mode = #tpu.pipeline_mode<synchronous>, transform_indices = @transform_0, window_bounds = array<i64: 32, 128>}, {pipeline_mode = #tpu.pipeline_mode<synchronous>, transform_indices = @transform_1, window_bounds = array<i64: 3, 128, 128>}, {pipeline_mode = #tpu.pipeline_mode<synchronous>, transform_indices = @transform_2, window_bounds = array<i64: 1, 128>}, {pipeline_mode = #tpu.pipeline_mode<synchronous>, transform_indices = @transform_3, window_bounds = array<i64: 1, 128>}, {pipeline_mode = #tpu.pipeline_mode<synchronous>, transform_indices = @transform_4, window_bounds = array<i64: 1, 128>}, {pipeline_mode = #tpu.pipeline_mode<synchronous>, transform_indices = @transform_5, window_bounds = array<i64: 3, 128, 128>}, {pipeline_mode = #tpu.pipeline_mode<synchronous>, transform_indices = @transform_6, window_bounds = array<i64: 1, 128>}, {pipeline_mode = #tpu.pipeline_mode<synchronous>, transform_indices = @transform_7, window_bounds = array<i64: 1, 128>}, {pipeline_mode = #tpu.pipeline_mode<synchronous>, transform_indices = @transform_8, window_bounds = array<i64: 1, 128>}, {pipeline_mode = #tpu.pipeline_mode<synchronous>, transform_indices = @transform_9, window_bounds = array<i64: 128, 128>}, {pipeline_mode = #tpu.pipeline_mode<synchronous>, transform_indices = @transform_10, window_bounds = array<i64: 8, 32>}, {pipeline_mode = #tpu.pipeline_mode<synchronous>, transform_indices = @transform_11, window_bounds = array<i64: 2, 32, 32>}, {pipeline_mode = #tpu.pipeline_mode<synchronous>, transform_indices = @transform_12, window_bounds = array<i64: 32, 128>}]} {
    %c0 = arith.constant 0 : index
    %c0_0 = arith.constant 0 : index
    %0 = vector.load %arg1[%c0, %c0_0] : memref<32x128xf32, #tpu.memory_space<vmem>>, vector<32x128xf32>
    %c0_1 = arith.constant 0 : index
    %c0_2 = arith.constant 0 : index
    %1 = vector.load %arg10[%c0_1, %c0_2] : memref<128x128xf32, #tpu.memory_space<vmem>>, vector<128x128xf32>
    %c0_3 = arith.constant 0 : index
    %c0_4 = arith.constant 0 : index
    %2 = vector.load %arg11[%c0_3, %c0_4] : memref<8x32xf32, #tpu.memory_space<vmem>>, vector<8x32xf32>
    %c0_5 = arith.constant 0 : index
    %c0_6 = arith.constant 0 : index
    %c0_7 = arith.constant 0 : index
    %3 = vector.load %arg12[%c0_5, %c0_6, %c0_7] : memref<2x32x32xf32, #tpu.memory_space<vmem>>, vector<1x32x32xf32>
    %4 = vector.shape_cast %3 : vector<1x32x32xf32> to vector<32x32xf32>
    %c1 = arith.constant 1 : index
    %c0_8 = arith.constant 0 : index
    %c0_9 = arith.constant 0 : index
    %5 = vector.load %arg12[%c1, %c0_8, %c0_9] : memref<2x32x32xf32, #tpu.memory_space<vmem>>, vector<1x32x32xf32>
    %6 = vector.shape_cast %5 : vector<1x32x32xf32> to vector<32x32xf32>
    %c0_10 = arith.constant 0 : index
    %c0_11 = arith.constant 0 : index
    %7 = vector.load %arg3[%c0_10, %c0_11] : memref<1x128xf32, #tpu.memory_space<vmem>>, vector<1x128xf32>
    %cst = arith.constant dense<0.000000e+00> : vector<32x128xf32>
    %8 = tpu.matmul %4, %0, %cst {dimension_numbers = #tpu.dot_dimension_numbers<[1], [0], [0], [1], [0, 0, 1, 1], [], []>} : vector<32x32xf32>, vector<32x128xf32>, vector<32x128xf32> -> vector<32x128xf32>
    %cst_12 = arith.constant dense<0.000000e+00> : vector<32x128xf32>
    %9 = tpu.matmul %6, %0, %cst_12 {dimension_numbers = #tpu.dot_dimension_numbers<[1], [0], [0], [1], [0, 0, 1, 1], [], []>} : vector<32x32xf32>, vector<32x128xf32>, vector<32x128xf32> -> vector<32x128xf32>
    %cst_13 = arith.constant 0.000000e+00 : f32
    %10 = vector.broadcast %cst_13 : f32 to vector<32x128xf32>
    %c0_14 = arith.constant 0 : index
    %c0_15 = arith.constant 0 : index
    %c0_16 = arith.constant 0 : index
    %11 = vector.load %arg2[%c0_14, %c0_15, %c0_16] : memref<3x128x128xf32, #tpu.memory_space<vmem>>, vector<1x128x128xf32>
    %12 = vector.shape_cast %11 : vector<1x128x128xf32> to vector<128x128xf32>
    %cst_17 = arith.constant dense<0.000000e+00> : vector<32x128xf32>
    %13 = tpu.matmul %8, %12, %cst_17 {dimension_numbers = #tpu.dot_dimension_numbers<[1], [0], [0], [1], [0, 0, 1, 1], [], []>} : vector<32x128xf32>, vector<128x128xf32>, vector<32x128xf32> -> vector<32x128xf32>
    %14 = arith.addf %10, %13 : vector<32x128xf32>
    %c1_18 = arith.constant 1 : index
    %c0_19 = arith.constant 0 : index
    %c0_20 = arith.constant 0 : index
    %15 = vector.load %arg2[%c1_18, %c0_19, %c0_20] : memref<3x128x128xf32, #tpu.memory_space<vmem>>, vector<1x128x128xf32>
    %16 = vector.shape_cast %15 : vector<1x128x128xf32> to vector<128x128xf32>
    %cst_21 = arith.constant dense<0.000000e+00> : vector<32x128xf32>
    %17 = tpu.matmul %0, %16, %cst_21 {dimension_numbers = #tpu.dot_dimension_numbers<[1], [0], [0], [1], [0, 0, 1, 1], [], []>} : vector<32x128xf32>, vector<128x128xf32>, vector<32x128xf32> -> vector<32x128xf32>
    %18 = arith.addf %14, %17 : vector<32x128xf32>
    %c2 = arith.constant 2 : index
    %c0_22 = arith.constant 0 : index
    %c0_23 = arith.constant 0 : index
    %19 = vector.load %arg2[%c2, %c0_22, %c0_23] : memref<3x128x128xf32, #tpu.memory_space<vmem>>, vector<1x128x128xf32>
    %20 = vector.shape_cast %19 : vector<1x128x128xf32> to vector<128x128xf32>
    %cst_24 = arith.constant dense<0.000000e+00> : vector<32x128xf32>
    %21 = tpu.matmul %9, %20, %cst_24 {dimension_numbers = #tpu.dot_dimension_numbers<[1], [0], [0], [1], [0, 0, 1, 1], [], []>} : vector<32x128xf32>, vector<128x128xf32>, vector<32x128xf32> -> vector<32x128xf32>
    %22 = arith.addf %18, %21 : vector<32x128xf32>
    %23 = vector.broadcast %7 : vector<1x128xf32> to vector<32x128xf32>
    %24 = arith.addf %22, %23 : vector<32x128xf32>
    %c0_25 = arith.constant 0 : index
    %c0_26 = arith.constant 0 : index
    %25 = vector.load %arg4[%c0_25, %c0_26] : memref<1x128xf32, #tpu.memory_space<vmem>>, vector<1x128xf32>
    %c0_27 = arith.constant 0 : index
    %c0_28 = arith.constant 0 : index
    %26 = vector.load %arg5[%c0_27, %c0_28] : memref<1x128xf32, #tpu.memory_space<vmem>>, vector<1x128xf32>
    %cst_29 = arith.constant dense<0.000000e+00> : vector<8x128xf32>
    %27 = tpu.matmul %2, %24, %cst_29 {dimension_numbers = #tpu.dot_dimension_numbers<[1], [0], [0], [1], [0, 0, 1, 1], [], []>} : vector<8x32xf32>, vector<32x128xf32>, vector<8x128xf32> -> vector<8x128xf32>
    %28 = arith.mulf %24, %24 : vector<32x128xf32>
    %cst_30 = arith.constant dense<0.000000e+00> : vector<8x128xf32>
    %29 = tpu.matmul %2, %28, %cst_30 {dimension_numbers = #tpu.dot_dimension_numbers<[1], [0], [0], [1], [0, 0, 1, 1], [], []>} : vector<8x32xf32>, vector<32x128xf32>, vector<8x128xf32> -> vector<8x128xf32>
    %cst_31 = arith.constant dense<0.000000e+00> : vector<8x128xf32>
    %30 = tpu.matmul %27, %1, %cst_31 {dimension_numbers = #tpu.dot_dimension_numbers<[1], [0], [0], [1], [0, 0, 1, 1], [], []>} : vector<8x128xf32>, vector<128x128xf32>, vector<8x128xf32> -> vector<8x128xf32>
    %cst_32 = arith.constant 0.001953125 : f32
    %31 = vector.broadcast %cst_32 : f32 to vector<8x128xf32>
    %32 = arith.mulf %30, %31 : vector<8x128xf32>
    %cst_33 = arith.constant dense<0.000000e+00> : vector<8x128xf32>
    %33 = tpu.matmul %29, %1, %cst_33 {dimension_numbers = #tpu.dot_dimension_numbers<[1], [0], [0], [1], [0, 0, 1, 1], [], []>} : vector<8x128xf32>, vector<128x128xf32>, vector<8x128xf32> -> vector<8x128xf32>
    %cst_34 = arith.constant 0.001953125 : f32
    %34 = vector.broadcast %cst_34 : f32 to vector<8x128xf32>
    %35 = arith.mulf %33, %34 : vector<8x128xf32>
    %36 = arith.mulf %32, %32 : vector<8x128xf32>
    %37 = arith.subf %35, %36 : vector<8x128xf32>
    %cst_35 = arith.constant 9.99999974E-6 : f32
    %38 = vector.broadcast %cst_35 : f32 to vector<8x128xf32>
    %39 = arith.addf %37, %38 : vector<8x128xf32>
    %40 = math.rsqrt %39 : vector<8x128xf32>
    %41 = vector.broadcast %25 : vector<1x128xf32> to vector<8x128xf32>
    %42 = arith.mulf %41, %40 : vector<8x128xf32>
    %43 = arith.mulf %32, %42 : vector<8x128xf32>
    %44 = vector.broadcast %26 : vector<1x128xf32> to vector<8x128xf32>
    %45 = arith.subf %44, %43 : vector<8x128xf32>
    %46 = vector.extract_strided_slice %42 {offsets = [0, 0], sizes = [1, 128], strides = [1, 1]} : vector<8x128xf32> to vector<1x128xf32>
    %47 = vector.broadcast %46 : vector<1x128xf32> to vector<32x128xf32>
    %48 = arith.mulf %24, %47 : vector<32x128xf32>
    %49 = vector.extract_strided_slice %45 {offsets = [0, 0], sizes = [1, 128], strides = [1, 1]} : vector<8x128xf32> to vector<1x128xf32>
    %50 = vector.broadcast %49 : vector<1x128xf32> to vector<32x128xf32>
    %51 = arith.addf %48, %50 : vector<32x128xf32>
    %cst_36 = arith.constant 0.000000e+00 : f32
    %52 = vector.broadcast %cst_36 : f32 to vector<32x128xf32>
    %53 = arith.maximumf %51, %52 : vector<32x128xf32>
    %c0_37 = arith.constant 0 : index
    %c0_38 = arith.constant 0 : index
    %54 = vector.load %arg7[%c0_37, %c0_38] : memref<1x128xf32, #tpu.memory_space<vmem>>, vector<1x128xf32>
    %cst_39 = arith.constant dense<0.000000e+00> : vector<32x128xf32>
    %55 = tpu.matmul %4, %53, %cst_39 {dimension_numbers = #tpu.dot_dimension_numbers<[1], [0], [0], [1], [0, 0, 1, 1], [], []>} : vector<32x32xf32>, vector<32x128xf32>, vector<32x128xf32> -> vector<32x128xf32>
    %cst_40 = arith.constant dense<0.000000e+00> : vector<32x128xf32>
    %56 = tpu.matmul %6, %53, %cst_40 {dimension_numbers = #tpu.dot_dimension_numbers<[1], [0], [0], [1], [0, 0, 1, 1], [], []>} : vector<32x32xf32>, vector<32x128xf32>, vector<32x128xf32> -> vector<32x128xf32>
    %cst_41 = arith.constant 0.000000e+00 : f32
    %57 = vector.broadcast %cst_41 : f32 to vector<32x128xf32>
    %c0_42 = arith.constant 0 : index
    %c0_43 = arith.constant 0 : index
    %c0_44 = arith.constant 0 : index
    %58 = vector.load %arg6[%c0_42, %c0_43, %c0_44] : memref<3x128x128xf32, #tpu.memory_space<vmem>>, vector<1x128x128xf32>
    %59 = vector.shape_cast %58 : vector<1x128x128xf32> to vector<128x128xf32>
    %cst_45 = arith.constant dense<0.000000e+00> : vector<32x128xf32>
    %60 = tpu.matmul %55, %59, %cst_45 {dimension_numbers = #tpu.dot_dimension_numbers<[1], [0], [0], [1], [0, 0, 1, 1], [], []>} : vector<32x128xf32>, vector<128x128xf32>, vector<32x128xf32> -> vector<32x128xf32>
    %61 = arith.addf %57, %60 : vector<32x128xf32>
    %c1_46 = arith.constant 1 : index
    %c0_47 = arith.constant 0 : index
    %c0_48 = arith.constant 0 : index
    %62 = vector.load %arg6[%c1_46, %c0_47, %c0_48] : memref<3x128x128xf32, #tpu.memory_space<vmem>>, vector<1x128x128xf32>
    %63 = vector.shape_cast %62 : vector<1x128x128xf32> to vector<128x128xf32>
    %cst_49 = arith.constant dense<0.000000e+00> : vector<32x128xf32>
    %64 = tpu.matmul %53, %63, %cst_49 {dimension_numbers = #tpu.dot_dimension_numbers<[1], [0], [0], [1], [0, 0, 1, 1], [], []>} : vector<32x128xf32>, vector<128x128xf32>, vector<32x128xf32> -> vector<32x128xf32>
    %65 = arith.addf %61, %64 : vector<32x128xf32>
    %c2_50 = arith.constant 2 : index
    %c0_51 = arith.constant 0 : index
    %c0_52 = arith.constant 0 : index
    %66 = vector.load %arg6[%c2_50, %c0_51, %c0_52] : memref<3x128x128xf32, #tpu.memory_space<vmem>>, vector<1x128x128xf32>
    %67 = vector.shape_cast %66 : vector<1x128x128xf32> to vector<128x128xf32>
    %cst_53 = arith.constant dense<0.000000e+00> : vector<32x128xf32>
    %68 = tpu.matmul %56, %67, %cst_53 {dimension_numbers = #tpu.dot_dimension_numbers<[1], [0], [0], [1], [0, 0, 1, 1], [], []>} : vector<32x128xf32>, vector<128x128xf32>, vector<32x128xf32> -> vector<32x128xf32>
    %69 = arith.addf %65, %68 : vector<32x128xf32>
    %70 = vector.broadcast %54 : vector<1x128xf32> to vector<32x128xf32>
    %71 = arith.addf %69, %70 : vector<32x128xf32>
    %c0_54 = arith.constant 0 : index
    %c0_55 = arith.constant 0 : index
    %72 = vector.load %arg8[%c0_54, %c0_55] : memref<1x128xf32, #tpu.memory_space<vmem>>, vector<1x128xf32>
    %c0_56 = arith.constant 0 : index
    %c0_57 = arith.constant 0 : index
    %73 = vector.load %arg9[%c0_56, %c0_57] : memref<1x128xf32, #tpu.memory_space<vmem>>, vector<1x128xf32>
    %cst_58 = arith.constant dense<0.000000e+00> : vector<8x128xf32>
    %74 = tpu.matmul %2, %71, %cst_58 {dimension_numbers = #tpu.dot_dimension_numbers<[1], [0], [0], [1], [0, 0, 1, 1], [], []>} : vector<8x32xf32>, vector<32x128xf32>, vector<8x128xf32> -> vector<8x128xf32>
    %75 = arith.mulf %71, %71 : vector<32x128xf32>
    %cst_59 = arith.constant dense<0.000000e+00> : vector<8x128xf32>
    %76 = tpu.matmul %2, %75, %cst_59 {dimension_numbers = #tpu.dot_dimension_numbers<[1], [0], [0], [1], [0, 0, 1, 1], [], []>} : vector<8x32xf32>, vector<32x128xf32>, vector<8x128xf32> -> vector<8x128xf32>
    %cst_60 = arith.constant dense<0.000000e+00> : vector<8x128xf32>
    %77 = tpu.matmul %74, %1, %cst_60 {dimension_numbers = #tpu.dot_dimension_numbers<[1], [0], [0], [1], [0, 0, 1, 1], [], []>} : vector<8x128xf32>, vector<128x128xf32>, vector<8x128xf32> -> vector<8x128xf32>
    %cst_61 = arith.constant 0.001953125 : f32
    %78 = vector.broadcast %cst_61 : f32 to vector<8x128xf32>
    %79 = arith.mulf %77, %78 : vector<8x128xf32>
    %cst_62 = arith.constant dense<0.000000e+00> : vector<8x128xf32>
    %80 = tpu.matmul %76, %1, %cst_62 {dimension_numbers = #tpu.dot_dimension_numbers<[1], [0], [0], [1], [0, 0, 1, 1], [], []>} : vector<8x128xf32>, vector<128x128xf32>, vector<8x128xf32> -> vector<8x128xf32>
    %cst_63 = arith.constant 0.001953125 : f32
    %81 = vector.broadcast %cst_63 : f32 to vector<8x128xf32>
    %82 = arith.mulf %80, %81 : vector<8x128xf32>
    %83 = arith.mulf %79, %79 : vector<8x128xf32>
    %84 = arith.subf %82, %83 : vector<8x128xf32>
    %cst_64 = arith.constant 9.99999974E-6 : f32
    %85 = vector.broadcast %cst_64 : f32 to vector<8x128xf32>
    %86 = arith.addf %84, %85 : vector<8x128xf32>
    %87 = math.rsqrt %86 : vector<8x128xf32>
    %88 = vector.broadcast %72 : vector<1x128xf32> to vector<8x128xf32>
    %89 = arith.mulf %88, %87 : vector<8x128xf32>
    %90 = arith.mulf %79, %89 : vector<8x128xf32>
    %91 = vector.broadcast %73 : vector<1x128xf32> to vector<8x128xf32>
    %92 = arith.subf %91, %90 : vector<8x128xf32>
    %93 = vector.extract_strided_slice %89 {offsets = [0, 0], sizes = [1, 128], strides = [1, 1]} : vector<8x128xf32> to vector<1x128xf32>
    %94 = vector.broadcast %93 : vector<1x128xf32> to vector<32x128xf32>
    %95 = arith.mulf %71, %94 : vector<32x128xf32>
    %96 = vector.extract_strided_slice %92 {offsets = [0, 0], sizes = [1, 128], strides = [1, 1]} : vector<8x128xf32> to vector<1x128xf32>
    %97 = vector.broadcast %96 : vector<1x128xf32> to vector<32x128xf32>
    %98 = arith.addf %95, %97 : vector<32x128xf32>
    %99 = arith.addf %98, %0 : vector<32x128xf32>
    %cst_65 = arith.constant 0.000000e+00 : f32
    %100 = vector.broadcast %cst_65 : f32 to vector<32x128xf32>
    %101 = arith.maximumf %99, %100 : vector<32x128xf32>
    %c0_66 = arith.constant 0 : index
    %c0_67 = arith.constant 0 : index
    %102 = vector.load %arg13[%c0_66, %c0_67] : memref<32x128xf32, #tpu.memory_space<vmem>>, vector<32x128xf32>
    tpu.vector_store %arg13[%c0_66, %c0_67], %101 {strides = array<i32>} : memref<32x128xf32, #tpu.memory_space<vmem>>, vector<32x128xf32>,
    return
  }
  func.func @transform_0(%arg0: i32) -> (i32, i32) {
    %c0_i32 = arith.constant 0 : i32
    %c0_i32_0 = arith.constant 0 : i32
    %c0_i32_1 = arith.constant 0 : i32
    return %c0_i32, %c0_i32_0 : i32, i32
  }
  func.func @transform_1(%arg0: i32) -> (i32, i32, i32) {
    %c0_i32 = arith.constant 0 : i32
    %c0_i32_0 = arith.constant 0 : i32
    %c0_i32_1 = arith.constant 0 : i32
    %c0_i32_2 = arith.constant 0 : i32
    return %c0_i32, %c0_i32_0, %c0_i32_1 : i32, i32, i32
  }
  func.func @transform_2(%arg0: i32) -> (i32, i32) {
    %c0_i32 = arith.constant 0 : i32
    %c0_i32_0 = arith.constant 0 : i32
    %c0_i32_1 = arith.constant 0 : i32
    return %c0_i32, %c0_i32_0 : i32, i32
  }
  func.func @transform_3(%arg0: i32) -> (i32, i32) {
    %c0_i32 = arith.constant 0 : i32
    %c0_i32_0 = arith.constant 0 : i32
    %c0_i32_1 = arith.constant 0 : i32
    return %c0_i32, %c0_i32_0 : i32, i32
  }
  func.func @transform_4(%arg0: i32) -> (i32, i32) {
    %c0_i32 = arith.constant 0 : i32
    %c0_i32_0 = arith.constant 0 : i32
    %c0_i32_1 = arith.constant 0 : i32
    return %c0_i32, %c0_i32_0 : i32, i32
  }
  func.func @transform_5(%arg0: i32) -> (i32, i32, i32) {
    %c0_i32 = arith.constant 0 : i32
    %c0_i32_0 = arith.constant 0 : i32
    %c0_i32_1 = arith.constant 0 : i32
    %c0_i32_2 = arith.constant 0 : i32
    return %c0_i32, %c0_i32_0, %c0_i32_1 : i32, i32, i32
  }
  func.func @transform_6(%arg0: i32) -> (i32, i32) {
    %c0_i32 = arith.constant 0 : i32
    %c0_i32_0 = arith.constant 0 : i32
    %c0_i32_1 = arith.constant 0 : i32
    return %c0_i32, %c0_i32_0 : i32, i32
  }
  func.func @transform_7(%arg0: i32) -> (i32, i32) {
    %c0_i32 = arith.constant 0 : i32
    %c0_i32_0 = arith.constant 0 : i32
    %c0_i32_1 = arith.constant 0 : i32
    return %c0_i32, %c0_i32_0 : i32, i32
  }
  func.func @transform_8(%arg0: i32) -> (i32, i32) {
    %c0_i32 = arith.constant 0 : i32
    %c0_i32_0 = arith.constant 0 : i32
    %c0_i32_1 = arith.constant 0 : i32
    return %c0_i32, %c0_i32_0 : i32, i32
  }
  func.func @transform_9(%arg0: i32) -> (i32, i32) {
    %c0_i32 = arith.constant 0 : i32
    %c0_i32_0 = arith.constant 0 : i32
    %c0_i32_1 = arith.constant 0 : i32
    return %c0_i32, %c0_i32_0 : i32, i32
  }
  func.func @transform_10(%arg0: i32) -> (i32, i32) {
    %c0_i32 = arith.constant 0 : i32
    %c0_i32_0 = arith.constant 0 : i32
    %c0_i32_1 = arith.constant 0 : i32
    return %c0_i32, %c0_i32_0 : i32, i32
  }
  func.func @transform_11(%arg0: i32) -> (i32, i32, i32) {
    %c0_i32 = arith.constant 0 : i32
    %c0_i32_0 = arith.constant 0 : i32
    %c0_i32_1 = arith.constant 0 : i32
    %c0_i32_2 = arith.constant 0 : i32
    return %c0_i32, %c0_i32_0, %c0_i32_1 : i32, i32, i32
  }
  func.func @transform_12(%arg0: i32) -> (i32, i32) {
    %c0_i32 = arith.constant 0 : i32
    %c0_i32_0 = arith.constant 0 : i32
    %c0_i32_1 = arith.constant 0 : i32
    return %c0_i32, %c0_i32_0 : i32, i32
  }
}

</mosaic_0001>

<bundles_post_ra>
// kernel: tpu_custom_call.1
= control target key start
LH: loop header
LB: loop body
LE: loop exit
PB: predicated region body
PF: predicated region fallthrough
CT: control target
= control target key end

     0   :  { %17 = vsyncpa [#allocation3], 0  ;;  %s1613_s0 = inlined_call_operand.hbm [shape: f32[32,128], index: 0, kind: input, shape index: {}]   ;;  %s1614_s1 = inlined_call_operand.hbm [shape: f32[3,128,128], index: 1, kind: input, shape index: {}]   ;;  %s1615_s2 = inlined_call_operand.vmem [shape: f32[1,128], index: 2, kind: input, shape index: {}]   ;;  %s1616_s3 = inlined_call_operand.hbm [shape: f32[1,128], index: 3, kind: input, shape index: {}]   ;;  %s1617_s4 = inlined_call_operand.hbm [shape: f32[1,128], index: 4, kind: input, shape index: {}]   ;;  %s1618_s5 = inlined_call_operand.hbm [shape: f32[3,128,128], index: 5, kind: input, shape index: {}]   ;;  %s1619_s6 = inlined_call_operand.hbm [shape: f32[1,128], index: 6, kind: input, shape index: {}]   ;;  %s1620_s7 = inlined_call_operand.hbm [shape: f32[1,128], index: 7, kind: input, shape index: {}]   ;;  %s1621_s8 = inlined_call_operand.hbm [shape: f32[1,128], index: 8, kind: input, shape index: {}]   ;;  %s1622_s9 = inlined_call_operand.hbm [shape: f32[128,128], index: 9, kind: input, shape index: {}]   ;;  %s1623_s10 = inlined_call_operand.vmem [shape: f32[8,32], index: 10, kind: input, shape index: {}]   ;;  %s1624_s11 = inlined_call_operand.hbm [shape: f32[2,32,32], index: 11, kind: input, shape index: {}]   ;;  %s1625_s12 = inlined_call_operand.hbm [shape: f32[32,128], index: 12, kind: output, shape index: {}]  }
   0x1   :  { %18 = vsyncpa [#allocation6], 0 }
   0x2   :  { %19 = vsyncpa [#allocation9], 0 }
   0x3   :  { %20 = vsyncpa [#allocation12], 0 }
   0x4   :  { %21 = vsyncpa [#allocation15], 0 }
   0x5   :  { %22 = vsyncpa [#allocation18], 0 }
   0x6   :  { %23 = vsyncpa [#allocation4], 0  ;;  %s41_s23 = sshll.u32 %s1614_s1, 4  ;;  %s1265_s24 = smov [#allocation5]   ;;  %s42_s23 = int_to_ptr.hbm [resolvable:$true] %s41_s23 }
   0x7   :  { %s43_s25 = sshll.u32 %s1265_s24, 4  ;;  %s68_s28 = sshll.u32 %s1617_s4, 4  ;;  %s44_s25 = int_to_ptr.vmem [resolvable:$true] %s43_s25  ;;  %s69_s28 = int_to_ptr.hbm [resolvable:$true] %s68_s28 }
   0x8   :  { %s1266_s29 = smov 128   ;;  %s1267_s30 = smov 8  }
   0x9   :  { %49 = dma.hbm_to_vmem [thread:$0]  %s42_s23, 6144, %s44_s25, [#allocation6], %s1266_s29, %s1266_s29, %s1267_s30  }
   0xa   :  { %s1268_s13 = smov [#allocation8]   ;;  %s92_s1 = sshll.u32 %s1619_s6, 4  ;;  %s93_s1 = int_to_ptr.hbm [resolvable:$true] %s92_s1 }
   0xb   :  { %s70_s14 = sshll.u32 %s1268_s13, 4  ;;  %s114_s4 = sshll.u32 %s1621_s8, 4  ;;  %s71_s14 = int_to_ptr.vmem [resolvable:$true] %s70_s14  ;;  %s115_s4 = int_to_ptr.hbm [resolvable:$true] %s114_s4 }
   0xc   :  { %73 = dma.hbm_to_vmem [thread:$0]  %s69_s28, 16, %s71_s14, [#allocation9]  }
   0xd   :  { %s1269_s19 = smov [#allocation11]   ;;  %s1270_s21 = smov [#allocation14]  }
   0xe   :  { %s94_s20 = sshll.u32 %s1269_s19, 4  ;;  %s116_s22 = sshll.u32 %s1270_s21, 4  ;;  %s95_s20 = int_to_ptr.vmem [resolvable:$true] %s94_s20  ;;  %s117_s22 = int_to_ptr.vmem [resolvable:$true] %s116_s22 }
   0xf   :  { %97 = dma.hbm_to_vmem [thread:$0]  %s93_s1, 16, %s95_s20, [#allocation12]  }
  0x10   :  { %s28_s25 = sshll.u32 %s1613_s0, 4  ;;  %s57_s27 = sshll.u32 %s1616_s3, 4  ;;  %s29_s25 = int_to_ptr.hbm [resolvable:$true] %s28_s25  ;;  %s58_s27 = int_to_ptr.hbm [resolvable:$true] %s57_s27 }
  0x11   :  { %119 = dma.hbm_to_vmem [thread:$0]  %s115_s4, 16, %s117_s22, [#allocation15]  }
  0x12   :  { %s1271_s28 = smov [#allocation2]   ;;  %s1272_s13 = smov [#allocation7]  }
  0x13   :  { %s30_s8 = sshll.u32 %s1271_s28, 4  ;;  %s59_s14 = sshll.u32 %s1272_s13, 4  ;;  %s31_s8 = int_to_ptr.vmem [resolvable:$true] %s30_s8  ;;  %s60_s14 = int_to_ptr.vmem [resolvable:$true] %s59_s14 }
  0x14   :  { %36 = dma.hbm_to_vmem [thread:$0]  %s29_s25, 512, %s31_s8, [#allocation3], %s1266_s29, %s1266_s29, %s1267_s30  }
  0x15   :  { %s78_s0 = sshll.u32 %s1618_s5, 4  ;;  %s103_s3 = sshll.u32 %s1620_s7, 4  ;;  %s79_s0 = int_to_ptr.hbm [resolvable:$true] %s78_s0  ;;  %s104_s3 = int_to_ptr.hbm [resolvable:$true] %s103_s3 }
  0x16   :  { %62 = dma.hbm_to_vmem [thread:$0]  %s58_s27, 16, %s60_s14, [#allocation6]  }
  0x17   :  { %s1273_s18 = smov [#allocation10]   ;;  %s1274_s19 = smov [#allocation13]  }
  0x18   :  { %s80_s4 = sshll.u32 %s1273_s18, 4  ;;  %s105_s20 = sshll.u32 %s1274_s19, 4  ;;  %s81_s4 = int_to_ptr.vmem [resolvable:$true] %s80_s4  ;;  %s106_s20 = int_to_ptr.vmem [resolvable:$true] %s105_s20 }
  0x19   :  { %86 = dma.hbm_to_vmem [thread:$0]  %s79_s0, 6144, %s81_s4, [#allocation9], %s1266_s29, %s1266_s29, %s1267_s30  }
  0x1a   :  { %s124_s5 = sshll.u32 %s1622_s9, 4  ;;  %s139_s7 = sshll.u32 %s1624_s11, 4  ;;  %s125_s5 = int_to_ptr.hbm [resolvable:$true] %s124_s5  ;;  %s140_s7 = int_to_ptr.hbm [resolvable:$true] %s139_s7 }
  0x1b   :  { %108 = dma.hbm_to_vmem [thread:$0]  %s104_s3, 16, %s106_s20, [#allocation12]  }
  0x1c   :  { %s1275_s25 = smov [#allocation16]   ;;  %s1276_s26 = smov [#allocation17]  }
  0x1d   :  { %s126_s6 = sshll.u32 %s1275_s25, 4  ;;  %s141_s27 = sshll.u32 %s1276_s26, 4  ;;  %s127_s6 = int_to_ptr.vmem [resolvable:$true] %s126_s6  ;;  %s142_s27 = int_to_ptr.vmem [resolvable:$true] %s141_s27 }
  0x1e   :  { %132 = dma.hbm_to_vmem [thread:$0]  %s125_s5, 2048, %s127_s6, [#allocation15], %s1266_s29, %s1266_s29, %s1267_s30  }
  0x1f   :  { %147 = dma.hbm_to_vmem [thread:$0]  %s140_s7, 1024, %s142_s27, [#allocation18], %s1266_s29, %s1266_s29, %s1267_s30  }
  0x20   :  { %1251 = dma.done.wait [#allocation3], 512  }
  0x21   :  { %1252 = vsyncadd [#allocation3], 4294966784 }
  0x22   :  { %1253 = dma.done.wait [#allocation6], 6160  }
  0x23   :  { %1254 = vsyncadd [#allocation6], 4294961136 }
  0x24   :  { %1255 = dma.done.wait [#allocation9], 6160  }
  0x25   :  { %1256 = vsyncadd [#allocation9], 4294961136 }
  0x26   :  { %1257 = dma.done.wait [#allocation12], 32  }
  0x27   :  { %1258 = vsyncadd [#allocation12], 4294967264 }
  0x28   :  { %1259 = dma.done.wait [#allocation15], 2064  }
  0x29   :  { %1260 = vsyncadd [#allocation15], 4294965232 }
  0x2a   :  { %1261 = dma.done.wait [#allocation18], 1024  }
  0x2b   :  { %1262 = vsyncadd [#allocation18], 4294966272  ;;  %v1388_v0 = vld [vmem:[#allocation2 + $0x18] sm:$0xff]  ;;  %v1390_v1 = vld [vmem:[#allocation2 + $0x10] sm:$0xff]  ;;  %vm219_vm0 = vcmask 261120   ;;  %s922_s15 = sshll.u32 %s1625_s12, 4  ;;  %s923_s15 = int_to_ptr.hbm [resolvable:$true] %s922_s15 }
  0x2c   :  { %244 = vmatpush.msra.mxu2 %v1388_v0  ;;  %285 = vmatpush.msra.mxu1 %v1388_v0  ;;  %v1394_v2 = vld [vmem:[#allocation2 + $0x8] sm:$0xff]  ;;  %v1398_v3 = vld [vmem:[#allocation2] sm:$0xff]  ;;  %v317_v4 = vld [vmem:[#allocation5 + $0x78] sm:$0xff] }
  0x2d   :  { %v1401_v5 = vld [vmem:[#allocation17] sm:$0xff]  ;;  %v334_v7 = vld [vmem:[#allocation5 + $0xf8] sm:$0xff]  ;;  %364 = vmatpush.msra.mxu3 %v317_v4  ;;  %v314_v14 = vld [vmem:[#allocation5 + $0x60] sm:$0xff] }
  0x2e   :  { %245 = vmatpush.msra.mxu2 %v1390_v1  ;;  %286 = vmatpush.msra.mxu1 %v1390_v1  ;;  %v1404_v6 = vld [vmem:[#allocation17 + $0x20] sm:$0xff]  ;;  %v409_v9 = vld [vmem:[#allocation5 + $0x178] sm:$0xff]  ;;  %v331_v16 = vld [vmem:[#allocation5 + $0xe0] sm:$0xff] }
  0x2f   :  { %v316_v8 = vld [vmem:[#allocation5 + $0x70] sm:$0xff]  ;;  %v315_v11 = vld [vmem:[#allocation5 + $0x68] sm:$0xff]  ;;  %410 = vmatpush.msra.mxu0 %v409_v9  ;;  %v313_v17 = vld [vmem:[#allocation5 + $0x58] sm:$0xff] }
  0x30   :  { %246 = vmatpush.msra.mxu2 %v1394_v2  ;;  %287 = vmatpush.msra.mxu1 %v1394_v2  ;;  %v333_v10 = vld [vmem:[#allocation5 + $0xf0] sm:$0xff]  ;;  %v332_v13 = vld [vmem:[#allocation5 + $0xe8] sm:$0xff]  ;;  %v330_v20 = vld [vmem:[#allocation5 + $0xd8] sm:$0xff] }
  0x31   :  { %365 = vmatpush.msra.mxu3 %v316_v8  ;;  %v408_v12 = vld [vmem:[#allocation5 + $0x170] sm:$0xff]  ;;  %v407_v15 = vld [vmem:[#allocation5 + $0x168] sm:$0xff]  ;;  %v406_v22 = vld [vmem:[#allocation5 + $0x160] sm:$0xff] }
  0x32   :  { %247 = vmatpush.msra.mxu2 %v1398_v3  ;;  %288 = vmatpush.msra.mxu1 %v1398_v3  ;;  %v1412_v18 = vld [vmem:[#allocation17 + $0x8] sm:$0xff]  ;;  %v328_v24 = vld [vmem:[#allocation5 + $0xc8] sm:$0xff]  ;;  %v310_v26 = vld [vmem:[#allocation5 + $0x40] sm:$0xff] }
  0x33   :  { %940 = vmatmul.msk.f32.vlgmr.msra.gmra.mxu2 %vm219_vm0, %v1401_v5  ;;  %944 = vmatmul.msk.f32.vlgmr.msra.gmra.mxu1 %vm219_vm0, %v1404_v6  ;;  %v1414_v19 = vld [vmem:[#allocation17 + $0x28] sm:$0xff]  ;;  %v311_v25 = vld [vmem:[#allocation5 + $0x48] sm:$0xff]  ;;  %v327_v29 = vld [vmem:[#allocation5 + $0xc0] sm:$0xff] }
  0x34   :  { %335 = vmatpush.msrb.mxu2 %v334_v7  ;;  %366 = vmatpush.msra.mxu3 %v315_v11  ;;  %v312_v21 = vld [vmem:[#allocation5 + $0x50] sm:$0xff]  ;;  %v405_v27 = vld [vmem:[#allocation5 + $0x158] sm:$0xff]  ;;  %v403_v35 = vld [vmem:[#allocation5 + $0x148] sm:$0xff] }
  0x35   :  { %411 = vmatpush.msra.mxu0 %v408_v12  ;;  %v329_v23 = vld [vmem:[#allocation5 + $0xd0] sm:$0xff]  ;;  %v309_v30 = vld [vmem:[#allocation5 + $0x38] sm:$0xff]  ;;  %v307_v37 = vld [vmem:[#allocation5 + $0x28] sm:$0xff] }
  0x36   :  { %336 = vmatpush.msrb.mxu2 %v333_v10  ;;  %367 = vmatpush.msra.mxu3 %v314_v14  ;;  %v404_v28 = vld [vmem:[#allocation5 + $0x150] sm:$0xff]  ;;  %v1420_v31 = vld [vmem:[#allocation17 + $0x10] sm:$0xff]  ;;  %v324_v39 = vld [vmem:[#allocation5 + $0xa8] sm:$0xff] }
  0x37   :  { %412 = vmatpush.msra.mxu0 %v407_v15  ;;  %v1422_v32 = vld [vmem:[#allocation17 + $0x30] sm:$0xff]  ;;  %v308_v34 = vld [vmem:[#allocation5 + $0x30] sm:$0xff]  ;;  %v1428_v44 = vld [vmem:[#allocation17 + $0x18] sm:$0xff] }
  0x38   :  { %337 = vmatpush.msrb.mxu2 %v332_v13  ;;  %368 = vmatpush.msra.mxu3 %v313_v17  ;;  %v326_v33 = vld [vmem:[#allocation5 + $0xb8] sm:$0xff]  ;;  %v325_v36 = vld [vmem:[#allocation5 + $0xb0] sm:$0xff]  ;;  %v402_v38 = vld [vmem:[#allocation5 + $0x140] sm:$0xff] }
  0x39   :  { %413 = vmatpush.msra.mxu0 %v406_v22  ;;  %v306_v40 = vld [vmem:[#allocation5 + $0x20] sm:$0xff]  ;;  %v401_v41 = vld [vmem:[#allocation5 + $0x138] sm:$0xff]  ;;  %v304_v47 = vld [vmem:[#allocation5 + $0x10] sm:$0xff] }
  0x3a   :  { %338 = vmatpush.msrb.mxu2 %v331_v16  ;;  %369 = vmatpush.msra.mxu3 %v312_v21  ;;  %v323_v42 = vld [vmem:[#allocation5 + $0xa0] sm:$0xff]  ;;  %v305_v43 = vld [vmem:[#allocation5 + $0x18] sm:$0xff]  ;;  %v400_v48 = vld [vmem:[#allocation5 + $0x130] sm:$0xff] }
  0x3b   :  { %941 = vmatmul.msk.f32.gmra.mxu2 %vm219_vm0, %v1412_v18  ;;  %945 = vmatmul.msk.f32.gmra.mxu1 %vm219_vm0, %v1414_v19  ;;  %v1430_v45 = vld [vmem:[#allocation17 + $0x38] sm:$0xff]  ;;  %v322_v46 = vld [vmem:[#allocation5 + $0x98] sm:$0xff]  ;;  %v321_v49 = vld [vmem:[#allocation5 + $0x90] sm:$0xff] }
  0x3c   :  { %339 = vmatpush.msrb.mxu2 %v330_v20  ;;  %370 = vmatpush.msra.mxu3 %v311_v25  ;;  %v303_v50 = vld [vmem:[#allocation5 + $0x8] sm:$0xff]  ;;  %v319_v53 = vld [vmem:[#allocation5 + $0x80] sm:$0xff]  ;;  %v397_v56 = vld [vmem:[#allocation5 + $0x118] sm:$0xff] }
  0x3d   :  { %414 = vmatpush.msra.mxu0 %v405_v27  ;;  %v399_v51 = vld [vmem:[#allocation5 + $0x128] sm:$0xff]  ;;  %v302_v54 = vld [vmem:[#allocation5] sm:$0xff]  ;;  %v396_v57 = vld [vmem:[#allocation5 + $0x110] sm:$0xff] }
  0x3e   :  { %340 = vmatpush.msrb.mxu2 %v329_v23  ;;  %371 = vmatpush.msra.mxu3 %v310_v26  ;;  %v320_v52 = vld [vmem:[#allocation5 + $0x88] sm:$0xff]  ;;  %v398_v55 = vld [vmem:[#allocation5 + $0x120] sm:$0xff]  ;;  %v1446_v17 = vld [vmem:[#allocation16 + $0x68] sm:$0xff] }
  0x3f   :  { %415 = vmatpush.msra.mxu0 %v404_v28  ;;  %v395_v58 = vld [vmem:[#allocation5 + $0x108] sm:$0xff]  ;;  %v394_v59 = vld [vmem:[#allocation5 + $0x100] sm:$0xff]  ;;  %v1462_v27 = vld [vmem:[#allocation16 + $0x48] sm:$0xff] }
  0x40   :  { %341 = vmatpush.msrb.mxu2 %v328_v24  ;;  %372 = vmatpush.msra.mxu3 %v309_v30  ;;  %v1440_v14 = vld [vmem:[#allocation16 + $0x78] sm:$0xff]  ;;  %v1442_v15 = vld [vmem:[#allocation16 + $0x70] sm:$0xff]  ;;  %v1450_v20 = vld [vmem:[#allocation16 + $0x60] sm:$0xff] }
  0x41   :  { %416 = vmatpush.msra.mxu0 %v403_v35  ;;  %v1454_v21 = vld [vmem:[#allocation16 + $0x58] sm:$0xff]  ;;  %v1458_v23 = vld [vmem:[#allocation16 + $0x50] sm:$0xff]  ;;  %v1466_v30 = vld [vmem:[#allocation16 + $0x40] sm:$0xff] }
  0x42   :  { %342 = vmatpush.msrb.mxu2 %v327_v29  ;;  %373 = vmatpush.msra.mxu3 %v308_v34  ;;  %v973_v34 = vld [vmem:[%s1615_s2] ss:$0 sm:$0xff] }
  0x43   :  { %942 = vmatmul.msk.f32.gmra.mxu2 %vm219_vm0, %v1420_v31  ;;  %946 = vmatmul.msk.f32.gmra.mxu1 %vm219_vm0, %v1422_v32 }
  0x44   :  { %343 = vmatpush.msrb.mxu2 %v326_v33  ;;  %374 = vmatpush.msra.mxu3 %v307_v37  ;;  %v1473_v37 = vld [vmem:[#allocation16 + $0x38] sm:$0xff] }
  0x45   :  { %417 = vmatpush.msra.mxu0 %v402_v38 }
  0x46   :  { %344 = vmatpush.msrb.mxu2 %v325_v36  ;;  %375 = vmatpush.msra.mxu3 %v306_v40  ;;  %v1479_v40 = vld [vmem:[#allocation16 + $0x30] sm:$0xff] }
  0x47   :  { %418 = vmatpush.msra.mxu0 %v401_v41 }
  0x48   :  { %345 = vmatpush.msrb.mxu2 %v324_v39  ;;  %376 = vmatpush.msra.mxu3 %v305_v43  ;;  %v1485_v43 = vld [vmem:[#allocation16 + $0x28] sm:$0xff] }
  0x49   :  { %419 = vmatpush.msra.mxu0 %v400_v48 }
  0x4a   :  { %346 = vmatpush.msrb.mxu2 %v323_v42  ;;  %377 = vmatpush.msra.mxu3 %v304_v47  ;;  %v1492_v47 = vld [vmem:[#allocation16 + $0x20] sm:$0xff] }
  0x4b   :  { %943 = vmatmul.msk.f32.gmra.mxu2 %vm219_vm0, %v1428_v44  ;;  %947 = vmatmul.msk.f32.gmra.mxu1 %vm219_vm0, %v1430_v45 }
  0x4c   :  { %347 = vmatpush.msrb.mxu2 %v322_v46  ;;  %378 = vmatpush.msra.mxu3 %v303_v50  ;;  %v1504_v50 = vld [vmem:[#allocation16 + $0x18] sm:$0xff] }
  0x4d   :  { %420 = vmatpush.msra.mxu0 %v399_v51 }
  0x4e   :  { %348 = vmatpush.msrb.mxu2 %v321_v49  ;;  %379 = vmatpush.msra.mxu3 %v302_v54  ;;  %v1501_v49 = vld [vmem:[%s1623_s10] sm:$0xff]  ;;  %v1519_v54 = vld [vmem:[#allocation16 + $0x8] sm:$0xff]  ;;  %s1277_s10 = smov [#allocation19]  }
  0x4f   :  { %421 = vmatpush.msra.mxu0 %v398_v55  ;;  %s920_s8 = sshll.u32 %s1277_s10, 4  ;;  %s921_s8 = int_to_ptr.vmem [resolvable:$true] %s920_s8 }
  0x50   :  { %349 = vmatpush.msrb.mxu2 %v320_v52  ;;  %520 = vmatpush.msrb.mxu3 %v1440_v14  ;;  %v1513_v52 = vld [vmem:[#allocation16 + $0x10] sm:$0xff] }
  0x51   :  { %422 = vmatpush.msra.mxu0 %v397_v56 }
  0x52   :  { %350 = vmatpush.msrb.mxu2 %v319_v53  ;;  %521 = vmatpush.msrb.mxu3 %v1442_v15 }
  0x53   :  { %351 = vmatmul.f32.vlgmr.msrb.gmra.mxu2 %v1398_v3  ;;  %423 = vmatpush.msra.mxu0 %v396_v57  ;;  %v1532_v57 = vld [vmem:[#allocation16] sm:$0xff] }
  0x54   :  { %522 = vmatpush.msrb.mxu3 %v1446_v17 }
  0x55   :  { %424 = vmatpush.msra.mxu0 %v395_v58 }
  0x56   :  { %523 = vmatpush.msrb.mxu3 %v1450_v20 }
  0x57   :  { %425 = vmatpush.msra.mxu0 %v394_v59 }
  0x58   :  { %524 = vmatpush.msrb.mxu3 %v1454_v21 }
  0x59   :  { %499 = vmatpush.msrb.mxu0 %v1440_v14 }
  0x5a   :  { %525 = vmatpush.msrb.mxu3 %v1458_v23 }
  0x5b   :  { %354 = vmatmul.f32.gmra.mxu2 %v1394_v2  ;;  %500 = vmatpush.msrb.mxu0 %v1442_v15 }
  0x5c   :  { %526 = vmatpush.msrb.mxu3 %v1462_v27 }
  0x5d   :  { %501 = vmatpush.msrb.mxu0 %v1446_v17 }
  0x5e   :  { %527 = vmatpush.msrb.mxu3 %v1466_v30 }
  0x5f   :  { %502 = vmatpush.msrb.mxu0 %v1450_v20 }
  0x60   :  { %528 = vmatpush.msrb.mxu3 %v1473_v37 }
  0x61   :  { %503 = vmatpush.msrb.mxu0 %v1454_v21 }
  0x62   :  { %529 = vmatpush.msrb.mxu3 %v1479_v40 }
  0x63   :  { %357 = vmatmul.f32.gmra.mxu2 %v1390_v1  ;;  %504 = vmatpush.msrb.mxu0 %v1458_v23 }
  0x64   :  { %530 = vmatpush.msrb.mxu3 %v1485_v43 }
  0x65   :  { %505 = vmatpush.msrb.mxu0 %v1462_v27 }
  0x66   :  { %531 = vmatpush.msrb.mxu3 %v1492_v47 }
  0x67   :  { %506 = vmatpush.msrb.mxu0 %v1466_v30 }
  0x68   :  { %532 = vmatpush.msrb.mxu3 %v1504_v50 }
  0x69   :  { %507 = vmatpush.msrb.mxu0 %v1473_v37 }
  0x6a   :  { %533 = vmatpush.msrb.mxu3 %v1513_v52 }
  0x6b   :  { %360 = vmatmul.f32.gmra.mxu2 %v1388_v0  ;;  %508 = vmatpush.msrb.mxu0 %v1479_v40 }
  0x6c   :  { %534 = vmatpush.msrb.mxu3 %v1519_v54 }
  0x6d   :  { %509 = vmatpush.msrb.mxu0 %v1485_v43 }
  0x6e   :  { %535 = vmatpush.msrb.mxu3 %v1532_v57 }
  0x6f   :  { %510 = vmatpush.msrb.mxu0 %v1492_v47 }
  0x71   :  { %511 = vmatpush.msrb.mxu0 %v1504_v50 }
  0x73   :  { %512 = vmatpush.msrb.mxu0 %v1513_v52 }
  0x75   :  { %513 = vmatpush.msrb.mxu0 %v1519_v54 }
  0x77   :  { %514 = vmatpush.msrb.mxu0 %v1532_v57 }
  0xb0   :  { %v290_v60 = vpop.f32.mrf.mxu1 }
  0xb1   :  { %426 = vmatmul.f32.vlgmr.msra.gmra.mxu0 %v290_v60 }
  0xb6   :  { %v249_v61 = vpop.f32.mrf.mxu2 }
  0xb7   :  { %380 = vmatmul.f32.vlgmr.msra.gmra.mxu3 %v249_v61 }
  0xb8   :  { %v293_v62 = vpop.f32.mrf.mxu1 }
  0xb9   :  { %429 = vmatmul.f32.gmra.mxu0 %v293_v62 }
  0xbe   :  { %v252_v63 = vpop.f32.mrf.mxu2 }
  0xbf   :  { %383 = vmatmul.f32.gmra.mxu3 %v252_v63 }
  0xc0   :  { %v296_v3 = vpop.f32.mrf.mxu1 }
  0xc1   :  { %432 = vmatmul.f32.gmra.mxu0 %v296_v3 }
  0xc6   :  { %v255_v4 = vpop.f32.mrf.mxu2 }
  0xc7   :  { %386 = vmatmul.f32.gmra.mxu3 %v255_v4 }
  0xc8   :  { %v299_v7 = vpop.f32.mrf.mxu1 }
  0xc9   :  { %435 = vmatmul.f32.gmra.mxu0 %v299_v7 }
  0xce   :  { %v258_v8 = vpop.f32.mrf.mxu2 }
  0xcf   :  { %389 = vmatmul.f32.gmra.mxu3 %v258_v8 }
  0xd6   :  { %v352_v2 = vpop.f32.mrf.mxu2 }
  0xde   :  { %v355_v0 = vpop.f32.mrf.mxu2 }
  0xe6   :  { %v358_v12 = vpop.f32.mrf.mxu2 }
  0xee   :  { %v361_v22 = vpop.f32.mrf.mxu2 }
 0x12e   :  { %v427_v1 = vpop.f32.mrf.mxu0 }
 0x136   :  { %v430_v10 = vpop.f32.mrf.mxu0 }
 0x13a   :  { %v381_v9 = vpop.f32.mrf.mxu3 }
 0x13b   :  { %v382_v33 = vadd.f32 %v381_v9, %v352_v2 }
 0x13d   :  { %v439_v41 = vadd.f32 %v427_v1, %v382_v33 }
 0x13e   :  { %v433_v13 = vpop.f32.mrf.mxu0 }
 0x13f   :  { %v1495_v48 = vadd.f32 %v973_v34, %v439_v41 }
 0x141   :  { %v475_v56 = vmul.f32 %v1495_v48, %v1495_v48 }
 0x142   :  { %v384_v11 = vpop.f32.mrf.mxu3 }
 0x143   :  { %v385_v28 = vadd.f32 %v384_v11, %v355_v0 }
 0x145   :  { %v440_v38 = vadd.f32 %v430_v10, %v385_v28  ;;  %v974_v10 = vld [vmem:[#allocation7] ss:$0 sm:$0xff] }
 0x146   :  { %v436_v26 = vpop.f32.mrf.mxu0 }
 0x147   :  { %v1488_v46 = vadd.f32 %v973_v34, %v440_v38 }
 0x149   :  { %v476_v55 = vmul.f32 %v1488_v46, %v1488_v46 }
 0x14a   :  { %v387_v16 = vpop.f32.mrf.mxu3 }
 0x14b   :  { %v388_v24 = vadd.f32 %v387_v16, %v358_v12  ;;  %v975_v16 = vld [vmem:[#allocation8] ss:$0 sm:$0xff] }
 0x14d   :  { %v441_v35 = vadd.f32 %v433_v13, %v388_v24 }
 0x14f   :  { %v1481_v42 = vadd.f32 %v973_v34, %v441_v35 }
 0x151   :  { %v477_v53 = vmul.f32 %v1481_v42, %v1481_v42 }
 0x152   :  { %v390_v25 = vpop.f32.mrf.mxu3 }
 0x153   :  { %v391_v29 = vadd.f32 %v390_v25, %v361_v22 }
 0x155   :  { %v442_v36 = vadd.f32 %v436_v26, %v391_v29 }
 0x157   :  { %v1475_v39 = vadd.f32 %v973_v34, %v442_v36 }
 0x159   :  { %467 = vmatpush.msrb.mxu1 %v1475_v39  ;;  %v478_v51 = vmul.f32 %v1475_v39, %v1475_v39 }
 0x15b   :  { %468 = vmatpush.msrb.mxu1 %v1481_v42 }
 0x15d   :  { %469 = vmatpush.msrb.mxu1 %v1488_v46 }
 0x15f   :  { %470 = vmatpush.msrb.mxu1 %v1495_v48 }
 0x160   :  { %948 = vmatmul.msk.f32.vlgmr.msrb.gmra.mxu1 %vm219_vm0, %v1501_v49 }
 0x161   :  { %491 = vmatpush.msra.mxu1 %v478_v51 }
 0x163   :  { %492 = vmatpush.msra.mxu1 %v477_v53 }
 0x165   :  { %493 = vmatpush.msra.mxu1 %v476_v55  ;;  %v666_v55 = vld [vmem:[#allocation10 + $0xe8] sm:$0xff] }
 0x167   :  { %494 = vmatpush.msra.mxu1 %v475_v56  ;;  %v665_v56 = vld [vmem:[#allocation10 + $0xe0] sm:$0xff] }
 0x168   :  { %949 = vmatmul.msk.f32.vlgmr.msra.gmra.mxu1 %vm219_vm0, %v1501_v49 }
 0x1dd   :  { %v472_v58 = vpop.f32.mrf.mxu1 }
 0x1de   :  { %515 = vmatmul.f32.vlgmr.msrb.gmra.mxu0 %v472_v58  ;;  %v664_v58 = vld [vmem:[#allocation10 + $0xd8] sm:$0xff] }
 0x1e5   :  { %v496_v59 = vpop.f32.mrf.mxu1 }
 0x1e6   :  { %536 = vmatmul.f32.vlgmr.msrb.gmra.mxu3 %v496_v59  ;;  %v663_v59 = vld [vmem:[#allocation10 + $0xd0] sm:$0xff] }
 0x25b   :  { %v516_v60 = vpop.f32.mrf.mxu0 }
 0x25c   :  { %v519_v61 = vmul.f32 0.001953125, %v516_v60  ;;  %v661_v60 = vld [vmem:[#allocation10 + $0xc0] sm:$0xff] }
 0x25e   :  { %v541_v63 = vmul.f32 %v519_v61, %v519_v61 }
 0x269   :  { %v537_v62 = vpop.f32.mrf.mxu3 }
 0x26a   :  { %v540_v3 = vmul.f32 0.001953125, %v537_v62  ;;  %v657_v62 = vld [vmem:[#allocation10 + $0xa0] sm:$0xff] }
 0x26c   :  { %v542_v4 = vsub.f32 %v540_v3, %v541_v63  ;;  %v655_v63 = vld [vmem:[#allocation10 + $0x90] sm:$0xff]  ;;  %v651_v3 = vld [vmem:[#allocation10 + $0x78] sm:$0xff] }
 0x26d   :  { %698 = vmatpush.msra.mxu2 %v651_v3 }
 0x26e   :  { %v543_v7 = vadd.f32 1e-05, %v542_v4  ;;  %v743_v4 = vld [vmem:[#allocation10 + $0x178] sm:$0xff] }
 0x26f   :  { %744 = vmatpush.msra.mxu3 %v743_v4 }
 0x270   :  { %979 = vrsqrt.f32 %v543_v7  ;;  %vm550_vm2 = vweird.f32 %v543_v7 }
 0x276   :  { %v980_v8 = vpop.eup %979 }
 0x277   :  { %v545_v2 = vmul.f32 %v980_v8, %v543_v7  ;;  %vm551_vm1 = vweird.f32 %v980_v8  ;;  %v654_v7 = vld [vmem:[#allocation10 + $0x88] sm:$0xff] }
 0x278   :  { %vm552_vm3 = vmor %vm550_vm2, %vm551_vm1 }
 0x279   :  { %v546_v1 = vmul.f32 %v980_v8, %v545_v2  ;;  %v741_v2 = vld [vmem:[#allocation10 + $0x168] sm:$0xff] }
 0x27b   :  { %v547_v9 = vmul.f32 0.5, %v546_v1  ;;  %v653_v1 = vld [vmem:[#allocation10 + $0x80] sm:$0xff] }
 0x27d   :  { %v548_v0 = vsub.f32 1.5, %v547_v9  ;;  %v648_v9 = vld [vmem:[#allocation10 + $0x60] sm:$0xff] }
 0x27f   :  { %v549_v11 = vmul.f32 %v980_v8, %v548_v0  ;;  %v739_v0 = vld [vmem:[#allocation10 + $0x158] sm:$0xff] }
 0x281   :  { %v553_v12 = vsel %vm552_vm3, %v980_v8, %v549_v11  ;;  %v649_v8 = vld [vmem:[#allocation10 + $0x68] sm:$0xff]  ;;  %v738_v11 = vld [vmem:[#allocation10 + $0x150] sm:$0xff] }
 0x282   :  { %v557_v13 = vmul.f32 %v974_v10, %v553_v12  ;;  %v646_v10 = vld [vmem:[#allocation10 + $0x50] sm:$0xff]  ;;  %v645_v12 = vld [vmem:[#allocation10 + $0x48] sm:$0xff] }
 0x284   :  { %v558_v22 = vmul.f32 %v557_v13, %v519_v61  ;;  %v563_v24 = vperm.slane %v557_v13, 0  ;;  %v659_v61 = vld [vmem:[#allocation10 + $0xb0] sm:$0xff]  ;;  %v737_v13 = vld [vmem:[#allocation10 + $0x148] sm:$0xff] }
 0x286   :  { %v562_v25 = vsub.f32 %v975_v16, %v558_v22  ;;  %v567_v26 = vmul.f32 %v563_v24, %v1475_v39  ;;  %v566_v29 = vmul.f32 %v563_v24, %v1481_v42  ;;  %v565_v35 = vmul.f32 %v563_v24, %v1488_v46  ;;  %v668_v46 = vld [vmem:[#allocation10 + $0xf8] sm:$0xff]  ;;  %v644_v16 = vld [vmem:[#allocation10 + $0x40] sm:$0xff] }
 0x287   :  { %v564_v41 = vmul.f32 %v563_v24, %v1495_v48  ;;  %v667_v48 = vld [vmem:[#allocation10 + $0xf0] sm:$0xff]  ;;  %v736_v22 = vld [vmem:[#allocation10 + $0x140] sm:$0xff]  ;;  %v643_v24 = vld [vmem:[#allocation10 + $0x38] sm:$0xff] }
 0x288   :  { %v568_v28 = vperm.slane %v562_v25, 0  ;;  %v735_v25 = vld [vmem:[#allocation10 + $0x138] sm:$0xff] }
 0x28a   :  { %v572_v33 = vadd.f32 %v568_v28, %v567_v26  ;;  %v571_v34 = vadd.f32 %v568_v28, %v566_v29  ;;  %v570_v38 = vadd.f32 %v568_v28, %v565_v35  ;;  %v569_v53 = vadd.f32 %v568_v28, %v564_v41  ;;  %v642_v26 = vld [vmem:[#allocation10 + $0x30] sm:$0xff]  ;;  %v641_v29 = vld [vmem:[#allocation10 + $0x28] sm:$0xff]  ;;  %v732_v35 = vld [vmem:[#allocation10 + $0x120] sm:$0xff] }
 0x28b   :  { %v734_v28 = vld [vmem:[#allocation10 + $0x130] sm:$0xff]  ;;  %v731_v41 = vld [vmem:[#allocation10 + $0x118] sm:$0xff] }
 0x28c   :  { %v1539_v36 = vmax.f32 %v572_v33, 0.0  ;;  %v1544_v51 = vmax.f32 %v571_v34, 0.0  ;;  %v1548_v39 = vmax.f32 %v570_v38, 0.0  ;;  %v573_v42 = vmax.f32 %v569_v53, 0.0  ;;  %v733_v33 = vld [vmem:[#allocation10 + $0x128] sm:$0xff]  ;;  %v640_v34 = vld [vmem:[#allocation10 + $0x20] sm:$0xff] }
 0x28d   :  { %v639_v38 = vld [vmem:[#allocation10 + $0x18] sm:$0xff]  ;;  %v638_v53 = vld [vmem:[#allocation10 + $0x10] sm:$0xff] }
 0x28e   :  { %590 = vmatpush.msrb.mxu1 %v1539_v36  ;;  %619 = vmatpush.msra.mxu0 %v1539_v36 }
 0x290   :  { %591 = vmatpush.msrb.mxu1 %v1544_v51  ;;  %620 = vmatpush.msra.mxu0 %v1544_v51 }
 0x292   :  { %592 = vmatpush.msrb.mxu1 %v1548_v39  ;;  %621 = vmatpush.msra.mxu0 %v1548_v39 }
 0x294   :  { %593 = vmatpush.msrb.mxu1 %v573_v42  ;;  %622 = vmatpush.msra.mxu0 %v573_v42 }
 0x295   :  { %950 = vmatmul.msk.f32.vlgmr.msrb.gmra.mxu1 %vm219_vm0, %v1401_v5  ;;  %954 = vmatmul.msk.f32.vlgmr.msra.gmra.mxu0 %vm219_vm0, %v1404_v6  ;;  %v662_v5 = vld [vmem:[#allocation10 + $0xc8] sm:$0xff]  ;;  %v660_v6 = vld [vmem:[#allocation10 + $0xb8] sm:$0xff] }
 0x296   :  { %669 = vmatpush.msra.mxu1 %v668_v46  ;;  %v729_v46 = vld [vmem:[#allocation10 + $0x108] sm:$0xff] }
 0x298   :  { %670 = vmatpush.msra.mxu1 %v667_v48  ;;  %v728_v48 = vld [vmem:[#allocation10 + $0x100] sm:$0xff] }
 0x29a   :  { %671 = vmatpush.msra.mxu1 %v666_v55 }
 0x29c   :  { %672 = vmatpush.msra.mxu1 %v665_v56 }
 0x29d   :  { %951 = vmatmul.msk.f32.gmra.mxu1 %vm219_vm0, %v1412_v18  ;;  %955 = vmatmul.msk.f32.gmra.mxu0 %vm219_vm0, %v1414_v19  ;;  %v658_v18 = vld [vmem:[#allocation10 + $0xa8] sm:$0xff]  ;;  %v656_v19 = vld [vmem:[#allocation10 + $0x98] sm:$0xff] }
 0x29e   :  { %673 = vmatpush.msra.mxu1 %v664_v58 }
 0x2a0   :  { %674 = vmatpush.msra.mxu1 %v663_v59 }
 0x2a2   :  { %675 = vmatpush.msra.mxu1 %v662_v5 }
 0x2a4   :  { %676 = vmatpush.msra.mxu1 %v661_v60 }
 0x2a5   :  { %952 = vmatmul.msk.f32.gmra.mxu1 %vm219_vm0, %v1420_v31  ;;  %956 = vmatmul.msk.f32.gmra.mxu0 %vm219_vm0, %v1422_v32  ;;  %v650_v31 = vld [vmem:[#allocation10 + $0x70] sm:$0xff] }
 0x2a6   :  { %677 = vmatpush.msra.mxu1 %v660_v6  ;;  %v742_v32 = vld [vmem:[#allocation10 + $0x170] sm:$0xff]  ;;  %699 = vmatpush.msra.mxu2 %v650_v31 }
 0x2a7   :  { %745 = vmatpush.msra.mxu3 %v742_v32 }
 0x2a8   :  { %678 = vmatpush.msra.mxu1 %v659_v61  ;;  %700 = vmatpush.msra.mxu2 %v649_v8  ;;  %v976_v61 = vld [vmem:[#allocation11] ss:$0 sm:$0xff] }
 0x2a9   :  { %746 = vmatpush.msra.mxu3 %v741_v2 }
 0x2aa   :  { %679 = vmatpush.msra.mxu1 %v658_v18  ;;  %701 = vmatpush.msra.mxu2 %v648_v9 }
 0x2ac   :  { %680 = vmatpush.msra.mxu1 %v657_v62 }
 0x2ad   :  { %953 = vmatmul.msk.f32.gmra.mxu1 %vm219_vm0, %v1428_v44  ;;  %957 = vmatmul.msk.f32.gmra.mxu0 %vm219_vm0, %v1430_v45  ;;  %v740_v44 = vld [vmem:[#allocation10 + $0x160] sm:$0xff]  ;;  %v647_v45 = vld [vmem:[#allocation10 + $0x58] sm:$0xff] }
 0x2ae   :  { %681 = vmatpush.msra.mxu1 %v656_v19  ;;  %747 = vmatpush.msra.mxu3 %v740_v44 }
 0x2af   :  { %702 = vmatpush.msra.mxu2 %v647_v45 }
 0x2b0   :  { %682 = vmatpush.msra.mxu1 %v655_v63  ;;  %748 = vmatpush.msra.mxu3 %v739_v0 }
 0x2b1   :  { %703 = vmatpush.msra.mxu2 %v646_v10 }
 0x2b2   :  { %683 = vmatpush.msra.mxu1 %v654_v7  ;;  %749 = vmatpush.msra.mxu3 %v738_v11 }
 0x2b3   :  { %704 = vmatpush.msra.mxu2 %v645_v12 }
 0x2b4   :  { %684 = vmatpush.msra.mxu1 %v653_v1  ;;  %750 = vmatpush.msra.mxu3 %v737_v13 }
 0x2b5   :  { %685 = vmatmul.f32.vlgmr.msra.gmra.mxu1 %v573_v42  ;;  %705 = vmatpush.msra.mxu2 %v644_v16  ;;  %v637_v42 = vld [vmem:[#allocation10 + $0x8] sm:$0xff] }
 0x2b6   :  { %830 = vmatpush.msrb.mxu1 %v1440_v14  ;;  %751 = vmatpush.msra.mxu3 %v736_v22 }
 0x2b7   :  { %706 = vmatpush.msra.mxu2 %v643_v24 }
 0x2b8   :  { %831 = vmatpush.msrb.mxu1 %v1442_v15  ;;  %752 = vmatpush.msra.mxu3 %v735_v25 }
 0x2b9   :  { %707 = vmatpush.msra.mxu2 %v642_v26 }
 0x2ba   :  { %832 = vmatpush.msrb.mxu1 %v1446_v17  ;;  %753 = vmatpush.msra.mxu3 %v734_v28 }
 0x2bb   :  { %708 = vmatpush.msra.mxu2 %v641_v29  ;;  %v977_v29 = vld [vmem:[#allocation13] ss:$0 sm:$0xff] }
 0x2bc   :  { %833 = vmatpush.msrb.mxu1 %v1450_v20  ;;  %754 = vmatpush.msra.mxu3 %v733_v33 }
 0x2bd   :  { %688 = vmatmul.f32.gmra.mxu1 %v1548_v39  ;;  %709 = vmatpush.msra.mxu2 %v640_v34  ;;  %v730_v39 = vld [vmem:[#allocation10 + $0x110] sm:$0xff] }
 0x2be   :  { %834 = vmatpush.msrb.mxu1 %v1454_v21  ;;  %755 = vmatpush.msra.mxu3 %v732_v35  ;;  %v978_v35 = vld [vmem:[#allocation14] ss:$0 sm:$0xff] }
 0x2bf   :  { %710 = vmatpush.msra.mxu2 %v639_v38 }
 0x2c0   :  { %835 = vmatpush.msrb.mxu1 %v1458_v23  ;;  %756 = vmatpush.msra.mxu3 %v731_v41 }
 0x2c1   :  { %711 = vmatpush.msra.mxu2 %v638_v53 }
 0x2c2   :  { %836 = vmatpush.msrb.mxu1 %v1462_v27  ;;  %757 = vmatpush.msra.mxu3 %v730_v39 }
 0x2c3   :  { %712 = vmatpush.msra.mxu2 %v637_v42 }
 0x2c4   :  { %837 = vmatpush.msrb.mxu1 %v1466_v30  ;;  %758 = vmatpush.msra.mxu3 %v729_v46 }
 0x2c5   :  { %691 = vmatmul.f32.gmra.mxu1 %v1544_v51  ;;  %v636_v51 = vld [vmem:[#allocation10] sm:$0xff] }
 0x2c6   :  { %838 = vmatpush.msrb.mxu1 %v1473_v37  ;;  %713 = vmatpush.msra.mxu2 %v636_v51 }
 0x2c7   :  { %759 = vmatpush.msra.mxu3 %v728_v48 }
 0x2c8   :  { %839 = vmatpush.msrb.mxu1 %v1479_v40  ;;  %851 = vmatpush.msrb.mxu2 %v1440_v14 }
 0x2ca   :  { %840 = vmatpush.msrb.mxu1 %v1485_v43  ;;  %852 = vmatpush.msrb.mxu2 %v1442_v15 }
 0x2cc   :  { %841 = vmatpush.msrb.mxu1 %v1492_v47  ;;  %853 = vmatpush.msrb.mxu2 %v1446_v17 }
 0x2cd   :  { %694 = vmatmul.f32.gmra.mxu1 %v1539_v36 }
 0x2ce   :  { %842 = vmatpush.msrb.mxu1 %v1504_v50  ;;  %854 = vmatpush.msrb.mxu2 %v1450_v20 }
 0x2d0   :  { %843 = vmatpush.msrb.mxu1 %v1513_v52  ;;  %855 = vmatpush.msrb.mxu2 %v1454_v21 }
 0x2d2   :  { %844 = vmatpush.msrb.mxu1 %v1519_v54  ;;  %856 = vmatpush.msrb.mxu2 %v1458_v23 }
 0x2d4   :  { %845 = vmatpush.msrb.mxu1 %v1532_v57  ;;  %857 = vmatpush.msrb.mxu2 %v1462_v27 }
 0x2d6   :  { %858 = vmatpush.msrb.mxu2 %v1466_v30 }
 0x2d8   :  { %859 = vmatpush.msrb.mxu2 %v1473_v37 }
 0x2da   :  { %860 = vmatpush.msrb.mxu2 %v1479_v40 }
 0x2dc   :  { %861 = vmatpush.msrb.mxu2 %v1485_v43 }
 0x2de   :  { %862 = vmatpush.msrb.mxu2 %v1492_v47 }
 0x2e0   :  { %863 = vmatpush.msrb.mxu2 %v1504_v50 }
 0x2e2   :  { %864 = vmatpush.msrb.mxu2 %v1513_v52 }
 0x2e4   :  { %865 = vmatpush.msrb.mxu2 %v1519_v54 }
 0x2e6   :  { %866 = vmatpush.msrb.mxu2 %v1532_v57 }
 0x312   :  { %v595_v14 = vpop.f32.mrf.mxu1  ;;  %v624_v15 = vpop.f32.mrf.mxu0 }
 0x313   :  { %714 = vmatmul.f32.vlgmr.msra.gmra.mxu2 %v595_v14  ;;  %760 = vmatmul.f32.vlgmr.msra.gmra.mxu3 %v624_v15 }
 0x31a   :  { %v598_v17 = vpop.f32.mrf.mxu1  ;;  %v627_v20 = vpop.f32.mrf.mxu0 }
 0x31b   :  { %717 = vmatmul.f32.gmra.mxu2 %v598_v17  ;;  %763 = vmatmul.f32.gmra.mxu3 %v627_v20 }
 0x322   :  { %v601_v21 = vpop.f32.mrf.mxu1  ;;  %v630_v23 = vpop.f32.mrf.mxu0 }
 0x323   :  { %720 = vmatmul.f32.gmra.mxu2 %v601_v21  ;;  %766 = vmatmul.f32.gmra.mxu3 %v630_v23  ;;  %v983_v21 = vld [vmem:[#allocation2] sm:$0xff] }
 0x32a   :  { %v604_v27 = vpop.f32.mrf.mxu1  ;;  %v633_v30 = vpop.f32.mrf.mxu0 }
 0x32b   :  { %723 = vmatmul.f32.gmra.mxu2 %v604_v27  ;;  %769 = vmatmul.f32.gmra.mxu3 %v633_v30  ;;  %v984_v27 = vld [vmem:[#allocation2 + $0x8] sm:$0xff] }
 0x332   :  { %v686_v37 = vpop.f32.mrf.mxu1 }
 0x33a   :  { %v689_v47 = vpop.f32.mrf.mxu1 }
 0x342   :  { %v692_v54 = vpop.f32.mrf.mxu1 }
 0x34a   :  { %v695_v55 = vpop.f32.mrf.mxu1 }
 0x396   :  { %v715_v40 = vpop.f32.mrf.mxu2  ;;  %v761_v43 = vpop.f32.mrf.mxu3 }
 0x397   :  { %v716_v6 = vadd.f32 %v715_v40, %v686_v37  ;;  %v985_v37 = vld [vmem:[#allocation2 + $0x10] sm:$0xff] }
 0x399   :  { %v773_v3 = vadd.f32 %v761_v43, %v716_v6  ;;  %v986_v43 = vld [vmem:[#allocation2 + $0x18] sm:$0xff] }
 0x39b   :  { %v780_v32 = vadd.f32 %v976_v61, %v773_v3 }
 0x39d   :  { %v806_v1 = vmul.f32 %v780_v32, %v780_v32 }
 0x39e   :  { %v718_v50 = vpop.f32.mrf.mxu2  ;;  %v764_v52 = vpop.f32.mrf.mxu3 }
 0x39f   :  { %v719_v5 = vadd.f32 %v718_v50, %v689_v47 }
 0x3a1   :  { %v774_v19 = vadd.f32 %v764_v52, %v719_v5 }
 0x3a3   :  { %v781_v4 = vadd.f32 %v976_v61, %v774_v19 }
 0x3a5   :  { %v807_v2 = vmul.f32 %v781_v4, %v781_v4 }
 0x3a6   :  { %v721_v57 = vpop.f32.mrf.mxu2  ;;  %v767_v36 = vpop.f32.mrf.mxu3 }
 0x3a7   :  { %v722_v56 = vadd.f32 %v721_v57, %v692_v54 }
 0x3a9   :  { %v775_v18 = vadd.f32 %v767_v36, %v722_v56 }
 0x3ab   :  { %v782_v31 = vadd.f32 %v976_v61, %v775_v18 }
 0x3ad   :  { %v808_v8 = vmul.f32 %v782_v31, %v782_v31 }
 0x3ae   :  { %v724_v58 = vpop.f32.mrf.mxu2  ;;  %v770_v59 = vpop.f32.mrf.mxu3 }
 0x3af   :  { %v725_v60 = vadd.f32 %v724_v58, %v695_v55 }
 0x3b1   :  { %v776_v62 = vadd.f32 %v770_v59, %v725_v60 }
 0x3b3   :  { %v783_v63 = vadd.f32 %v976_v61, %v776_v62 }
 0x3b5   :  { %798 = vmatpush.msrb.mxu0 %v783_v63  ;;  %v809_v7 = vmul.f32 %v783_v63, %v783_v63 }
 0x3b7   :  { %799 = vmatpush.msrb.mxu0 %v782_v31 }
 0x3b9   :  { %800 = vmatpush.msrb.mxu0 %v781_v4 }
 0x3bb   :  { %801 = vmatpush.msrb.mxu0 %v780_v32 }
 0x3bc   :  { %958 = vmatmul.msk.f32.vlgmr.msrb.gmra.mxu0 %vm219_vm0, %v1501_v49 }
 0x3bd   :  { %822 = vmatpush.msra.mxu0 %v809_v7 }
 0x3bf   :  { %823 = vmatpush.msra.mxu0 %v808_v8 }
 0x3c1   :  { %824 = vmatpush.msra.mxu0 %v807_v2 }
 0x3c3   :  { %825 = vmatpush.msra.mxu0 %v806_v1 }
 0x3c4   :  { %959 = vmatmul.msk.f32.vlgmr.msra.gmra.mxu0 %vm219_vm0, %v1501_v49 }
 0x439   :  { %v803_v9 = vpop.f32.mrf.mxu0 }
 0x43a   :  { %846 = vmatmul.f32.vlgmr.msrb.gmra.mxu1 %v803_v9 }
 0x441   :  { %v827_v44 = vpop.f32.mrf.mxu0 }
 0x442   :  { %867 = vmatmul.f32.vlgmr.msrb.gmra.mxu2 %v827_v44 }
 0x4b7   :  { %v847_v45 = vpop.f32.mrf.mxu1 }
 0x4b8   :  { %v850_v0 = vmul.f32 0.001953125, %v847_v45 }
 0x4ba   :  { %v872_v11 = vmul.f32 %v850_v0, %v850_v0 }
 0x4c5   :  { %v868_v10 = vpop.f32.mrf.mxu2 }
 0x4c6   :  { %v871_v12 = vmul.f32 0.001953125, %v868_v10 }
 0x4c8   :  { %v873_v13 = vsub.f32 %v871_v12, %v872_v11 }
 0x4ca   :  { %v874_v16 = vadd.f32 1e-05, %v873_v13 }
 0x4cc   :  { %981 = vrsqrt.f32 %v874_v16  ;;  %vm881_vm5 = vweird.f32 %v874_v16 }
 0x4d2   :  { %v982_v22 = vpop.eup %981 }
 0x4d3   :  { %v876_v24 = vmul.f32 %v982_v22, %v874_v16  ;;  %vm882_vm4 = vweird.f32 %v982_v22 }
 0x4d4   :  { %vm883_vm6 = vmor %vm881_vm5, %vm882_vm4 }
 0x4d5   :  { %v877_v25 = vmul.f32 %v982_v22, %v876_v24 }
 0x4d7   :  { %v878_v26 = vmul.f32 0.5, %v877_v25 }
 0x4d9   :  { %v879_v28 = vsub.f32 1.5, %v878_v26 }
 0x4db   :  { %v880_v49 = vmul.f32 %v982_v22, %v879_v28 }
 0x4dd   :  { %v884_v33 = vsel %vm883_vm6, %v982_v22, %v880_v49 }
 0x4de   :  { %v888_v34 = vmul.f32 %v977_v29, %v884_v33 }
 0x4e0   :  { %v889_v38 = vmul.f32 %v888_v34, %v850_v0  ;;  %v894_v41 = vperm.slane %v888_v34, 0 }
 0x4e2   :  { %v893_v53 = vsub.f32 %v978_v35, %v889_v38  ;;  %v895_v39 = vmul.f32 %v894_v41, %v780_v32  ;;  %v896_v51 = vmul.f32 %v894_v41, %v781_v4  ;;  %v897_v46 = vmul.f32 %v894_v41, %v782_v31 }
 0x4e3   :  { %v898_v48 = vmul.f32 %v894_v41, %v783_v63 }
 0x4e4   :  { %v899_v42 = vperm.slane %v893_v53, 0 }
 0x4e6   :  { %v900_v14 = vadd.f32 %v899_v42, %v895_v39  ;;  %v901_v15 = vadd.f32 %v899_v42, %v896_v51  ;;  %v902_v17 = vadd.f32 %v899_v42, %v897_v46  ;;  %v903_v20 = vadd.f32 %v899_v42, %v898_v48 }
 0x4e8   :  { %v904_v23 = vadd.f32 %v983_v21, %v900_v14  ;;  %v905_v30 = vadd.f32 %v984_v27, %v901_v15  ;;  %v906_v40 = vadd.f32 %v985_v37, %v902_v17  ;;  %v907_v47 = vadd.f32 %v986_v43, %v903_v20 }
 0x4ea   :  { %v908_v50 = vmax.f32 %v904_v23, 0.0  ;;  %v909_v52 = vmax.f32 %v905_v30, 0.0  ;;  %v910_v54 = vmax.f32 %v906_v40, 0.0  ;;  %v911_v57 = vmax.f32 %v907_v47, 0.0 }
 0x4ec   :  { %912 = vst [vmem:[#allocation19] sm:$0xff] %v908_v50 }
 0x4ed   :  { %913 = vst [vmem:[#allocation19 + $0x8] sm:$0xff] %v909_v52 }
 0x4ee   :  { %914 = vst [vmem:[#allocation19 + $0x10] sm:$0xff] %v910_v54 }
 0x4ef   :  { %915 = vst [vmem:[#allocation19 + $0x18] sm:$0xff] %v911_v57 }
 0x4f0   :  { %928 = dma.vmem_to_hbm [thread:$0]  %s921_s8, 512, %s923_s15, [#allocation4], %s1266_s29, %s1266_s29, %s1267_s30  }
 0x4f1   :  { %1263 = dma.done.wait [#allocation4], 512  }
 0x4f2   :  { %1264 = vsyncadd [#allocation4], 4294966784 }
 0x4f3   :  { %933 = vsyncpa [#allocation3], 1 }
 0x4f4   :  { %934 = vsyncpa [#allocation6], 1 }
 0x4f5   :  { %935 = vsyncpa [#allocation9], 1 }
 0x4f6   :  { %936 = vsyncpa [#allocation12], 1 }
 0x4f7   :  { %937 = vsyncpa [#allocation15], 1 }
 0x4f8   :  { %938 = vsyncpa [#allocation18], 1 }
 0x4f9   :  { %939 = vsyncpa [#allocation4], 1 }

</bundles_post_ra>
